<compile_context>
chip_gen: v7x
topology: tpu7x:2x2x1
jax: 0.10.0
libtpu: 0.0.40
codegen_flags: <defaults>
</compile_context>

<pallas_src>
import math
import jax
import jax.numpy as jnp
from jax.experimental import pallas as pl
from jax.experimental.pallas import tpu as pltpu


def _round_up(x, m):
    return ((x + m - 1) // m) * m


def _support_kernel(feature_ref, weight_ref, support_ref):
    # support = relu(feature @ weight): bf16 MXU inputs, f32 accumulation (VPU relu).
    s = jnp.dot(feature_ref[...], weight_ref[...],
                preferred_element_type=jnp.float32)
    support_ref[...] = jnp.maximum(s, 0.0).astype(support_ref.dtype)


def _aggregate_kernel(adj_ref, support_ref, bias_ref, out_ref, acc_ref):
    # output[i-tile] = sum_k adj[i-tile, k-tile] @ support[k-tile] + bias
    k = pl.program_id(1)

    @pl.when(k == 0)
    def _():
        acc_ref[...] = jnp.zeros_like(acc_ref)

    acc_ref[...] += jnp.dot(adj_ref[...], support_ref[...],
                            preferred_element_type=jnp.float32)

    @pl.when(k == pl.num_programs(1) - 1)
    def _():
        # Bias add only once per output tile, in the finalize branch.
        out_ref[...] = (acc_ref[...] + bias_ref[...]).astype(out_ref.dtype)


def item_graph_convolution(feature, adj, weight, bias=None, *,
                           row_tile=512, vmem_limit_bytes=64 << 20):
    """relu(feature @ weight) then adj @ (.) + bias, as two Pallas TPU passes."""
    N, F = feature.shape
    Fw, E = weight.shape
    assert F == Fw
    assert adj.shape == (N, N)

    # Lane-dense padding: last dims to multiples of 128; rows to tile multiples.
    E_pad = _round_up(E, 128)
    F_pad = _round_up(F, 128)
    tm = tk = min(row_tile, _round_up(N, 128))   # 128-aligned, capped for v7x VMEM
    N_pad = _round_up(N, tm)

    # Zero-padded, bf16 MXU inputs (bias stays f32; added after f32 accumulation).
    feat_p = jnp.zeros((N_pad, F_pad), jnp.bfloat16).at[:N, :F].set(
        feature.astype(jnp.bfloat16))
    w_p = jnp.zeros((F_pad, E_pad), jnp.bfloat16).at[:F, :E].set(
        weight.astype(jnp.bfloat16))
    adj_p = jnp.zeros((N_pad, N_pad), jnp.bfloat16).at[:N, :N].set(
        adj.astype(jnp.bfloat16))
    if bias is None:
        bias_p = jnp.zeros((1, E_pad), jnp.float32)
    else:
        bias_p = jnp.zeros((1, E_pad), jnp.float32).at[0, :E].set(
            bias.astype(jnp.float32))

    # Pass 1: support = relu(feature @ weight), row-tiled; weight fully resident.
    support = pl.pallas_call(
        _support_kernel,
        out_shape=jax.ShapeDtypeStruct((N_pad, E_pad), jnp.bfloat16),
        grid_spec=pltpu.PrefetchScalarGridSpec(
            num_scalar_prefetch=0,
            grid=(N_pad // tm,),
            in_specs=[pl.BlockSpec((tm, F_pad), lambda i: (i, 0)),
                      pl.BlockSpec((F_pad, E_pad), lambda i: (0, 0))],
            out_specs=pl.BlockSpec((tm, E_pad), lambda i: (i, 0))),
        compiler_params=pltpu.CompilerParams(
            dimension_semantics=("parallel",),
            vmem_limit_bytes=vmem_limit_bytes),
    )(feat_p, w_p)

    # Pass 2: out = adj @ support + bias, tiled with reduction axis last.
    # NOTE: E_pad is kept un-tiled (accumulator (tm, E_pad) f32 stays in VMEM);
    # fine for embedding sizes up to a few thousand.
    out_p = pl.pallas_call(
        _aggregate_kernel,
        out_shape=jax.ShapeDtypeStruct((N_pad, E_pad), jnp.float32),
        grid_spec=pltpu.PrefetchScalarGridSpec(
            num_scalar_prefetch=0,
            grid=(N_pad // tm, N_pad // tk),
            in_specs=[pl.BlockSpec((tm, tk), lambda i, k: (i, k)),
                      pl.BlockSpec((tk, E_pad), lambda i, k: (k, 0)),
                      pl.BlockSpec((1, E_pad), lambda i, k: (0, 0))],
            out_specs=pl.BlockSpec((tm, E_pad), lambda i, k: (i, 0)),
            scratch_shapes=[pltpu.VMEM((tm, E_pad), jnp.float32)]),
        compiler_params=pltpu.CompilerParams(
            dimension_semantics=("parallel", "arbitrary"),
            vmem_limit_bytes=vmem_limit_bytes),
    )(adj_p, support, bias_p)

    return out_p[:N, :E]


def _reference(feature, adj, weight, bias):
    support = jnp.maximum(
        jnp.dot(feature, weight, preferred_element_type=jnp.float32), 0.0)
    return jnp.dot(adj, support, preferred_element_type=jnp.float32) + bias[None, :]


def _make_inputs(key, N, F, E):
    k_feat, k_adj, k_w, k_b = jax.random.split(key, 4)
    # Mirror reset_parameters(): uniform(-stdv, stdv), stdv = 1/sqrt(embedding_size)
    stdv = 1.0 / math.sqrt(E)
    weight = jax.random.uniform(k_w, (F, E), jnp.float32, minval=-stdv, maxval=stdv)
    bias = jax.random.uniform(k_b, (E,), jnp.float32, minval=-stdv, maxval=stdv)
    feature = jax.random.normal(k_feat, (N, F), jnp.float32)
    # Dense adjacency (torch.spmm with a dense operand is just a matmul here).
    adj = (jax.random.uniform(k_adj, (N, N)) < 0.3).astype(jnp.float32)
    adj = adj + jnp.eye(N, dtype=jnp.float32)                       # self loops
    adj = adj / jnp.maximum(adj.sum(axis=1, keepdims=True), 1.0)    # row-normalize
    return feature, adj, weight, bias


if __name__ == "__main__":
    key = jax.random.PRNGKey(0)
    k1, k2 = jax.random.split(key)

    # Case 1: module's toy shapes (N nodes, features_size F, embedding_size E).
    feature, adj, weight, bias = _make_inputs(k1, 16, 32, 64)
    out = item_graph_convolution(feature, adj, weight, bias)
    jax.block_until_ready(out)
    assert out.shape == (16, 64)

    # Tight check vs. a reference fed the same bf16-rounded MXU inputs
    # (f32 accumulation), plus a loose check vs. the pure f32 reference.
    ref_bf16 = _reference(feature.astype(jnp.bfloat16).astype(jnp.float32),
                          adj.astype(jnp.bfloat16).astype(jnp.float32),
                          weight.astype(jnp.bfloat16).astype(jnp.float32), bias)
    ref_f32 = _reference(feature, adj, weight, bias)
    assert jnp.allclose(out, ref_bf16, atol=2e-3, rtol=2e-3), "mismatch vs bf16 ref"
    assert jnp.allclose(out, ref_f32, atol=3e-2, rtol=3e-2), "mismatch vs f32 ref"

    # Case 2: non-multiple shapes with forced small tiles to exercise the
    # multi-tile accumulating grid and the zero-padding path.
    feature2, adj2, weight2, bias2 = _make_inputs(k2, 300, 96, 160)
    out2 = item_graph_convolution(feature2, adj2, weight2, bias2, row_tile=128)
    jax.block_until_ready(out2)
    assert out2.shape == (300, 160)
    ref2 = _reference(feature2.astype(jnp.bfloat16).astype(jnp.float32),
                      adj2.astype(jnp.bfloat16).astype(jnp.float32),
                      weight2.astype(jnp.bfloat16).astype(jnp.float32), bias2)
    assert jnp.allclose(out2, ref2, atol=2e-3, rtol=2e-3), "tiled mismatch vs bf16 ref"

    print("KERNEL_OK")
</pallas_src>

<mosaic_0001>
module attributes {stable_mosaic.version = 11 : i64} {
  func.func @_support_kernel(%arg0: i32, %arg1: memref<128x128xbf16, #tpu.memory_space<vmem>>, %arg2: memref<128x128xbf16, #tpu.memory_space<vmem>>, %arg3: memref<128x128xbf16, #tpu.memory_space<vmem>>) attributes {dimension_semantics = [#tpu.dimension_semantics<parallel>], iteration_bounds = array<i64: 1>, scalar_prefetch = 0 : i64, scratch_operands = 0 : i64, tpu.core_type = #tpu.core_type<tc>, window_params = [{transform_indices = @transform_0, window_bounds = array<i64: 128, 128>}, {pipeline_mode = #tpu.pipeline_mode<synchronous>, transform_indices = @transform_1, window_bounds = array<i64: 128, 128>}, {transform_indices = @transform_2, window_bounds = array<i64: 128, 128>}]} {
    %c0 = arith.constant 0 : index
    %c0_0 = arith.constant 0 : index
    %0 = vector.load %arg1[%c0, %c0_0] : memref<128x128xbf16, #tpu.memory_space<vmem>>, vector<128x128xbf16>
    %c0_1 = arith.constant 0 : index
    %c0_2 = arith.constant 0 : index
    %1 = vector.load %arg2[%c0_1, %c0_2] : memref<128x128xbf16, #tpu.memory_space<vmem>>, vector<128x128xbf16>
    %cst = arith.constant dense<0.000000e+00> : vector<128x128xf32>
    %2 = tpu.matmul %0, %1, %cst {dimension_numbers = #tpu.dot_dimension_numbers<[1], [0], [0], [1], [0, 0, 1, 1], [], []>} : vector<128x128xbf16>, vector<128x128xbf16>, vector<128x128xf32> -> vector<128x128xf32>
    %cst_3 = arith.constant 0.000000e+00 : f32
    %3 = vector.broadcast %cst_3 : f32 to vector<128x128xf32>
    %4 = arith.maximumf %2, %3 : vector<128x128xf32>
    %5 = arith.truncf %4 : vector<128x128xf32> to vector<128x128xbf16>
    %c0_4 = arith.constant 0 : index
    %c0_5 = arith.constant 0 : index
    %6 = vector.load %arg3[%c0_4, %c0_5] : memref<128x128xbf16, #tpu.memory_space<vmem>>, vector<128x128xbf16>
    tpu.vector_store %arg3[%c0_4, %c0_5], %5 {strides = array<i32>} : memref<128x128xbf16, #tpu.memory_space<vmem>>, vector<128x128xbf16>,
    return
  }
  func.func @transform_0(%arg0: i32) -> (i32, i32) {
    %c0_i32 = arith.constant 0 : i32
    %c0_i32_0 = arith.constant 0 : i32
    return %arg0, %c0_i32 : i32, i32
  }
  func.func @transform_1(%arg0: i32) -> (i32, i32) {
    %c0_i32 = arith.constant 0 : i32
    %c0_i32_0 = arith.constant 0 : i32
    %c0_i32_1 = arith.constant 0 : i32
    return %c0_i32, %c0_i32_0 : i32, i32
  }
  func.func @transform_2(%arg0: i32) -> (i32, i32) {
    %c0_i32 = arith.constant 0 : i32
    %c0_i32_0 = arith.constant 0 : i32
    return %arg0, %c0_i32 : i32, i32
  }
}

</mosaic_0001>

<bundles_post_ra>
// kernel: tpu_custom_call.1
= control target key start
LH: loop header
LB: loop body
LE: loop exit
PB: predicated region body
PF: predicated region fallthrough
CT: control target
= control target key end

     0   :  { %7 = vsyncpa [#allocation3], 0  ;;  %s697_s0 = inlined_call_operand.hbm [shape: bf16[128,128], index: 0, kind: input, shape index: {}]   ;;  %s698_s1 = inlined_call_operand.hbm [shape: bf16[128,128], index: 1, kind: input, shape index: {}]   ;;  %s699_s2 = inlined_call_operand.hbm [shape: bf16[128,128], index: 2, kind: output, shape index: {}]  }
   0x1   :  { %8 = vsyncpa [#allocation6], 0 }
   0x2   :  { %9 = vsyncpa [#allocation4], 0  ;;  %s632_s9 = smov [#allocation2]   ;;  %s560_s13 = scalar_lea.hbm %s697_s0, 1024 }
   0x3   :  { %s15_s10 = sshll.u32 %s632_s9, 4  ;;  %p561_p0 = scmp.ne.s32.totalorder %s697_s0, %s560_s13  ;;  %s16_s10 = int_to_ptr.vmem [resolvable:$true] %s15_s10 }
   0x4   :  { %p564_p1 = scmp.lt.u32.totalorder %s560_s13, %s697_s0 }
   0x6   :  { %p566_p2 = pnand %p564_p1, %p561_p0 }
   0x8   :  { %569 = shalt.err (!%p566_p2)
}
   0x9   :  { %s570_s18 = scalar_lea.vmem %s16_s10, 1024  ;;  %p575_p4 = scmp.lt.s32.totalorder %s16_s10, %s16_s10 }
   0xa   :  { %p571_p3 = scmp.ne.s32.totalorder %s16_s10, %s570_s18  ;;  %p576_p5 = scmp.lt.s32.totalorder %s570_s18, %s570_s18 }
   0xc   :  { %p577_p6 = por %p576_p5, %p575_p4 }
   0xe   :  { %p578_p7 = pnand %p577_p6, %p571_p3 }
  0x10   :  { %581 = shalt.err (!%p578_p7)
}
  0x11   :  { %s633_s19 = smov 64   ;;  %s634_s20 = smov 4  }
  0x12   :  { %21 = dma.hbm_to_vmem [thread:$0]  %s697_s0, 1024, %s16_s10, [#allocation3], %s633_s19, %s633_s19, %s634_s20  }
  0x13   :  { %s635_s23 = smov [#allocation5]   ;;  %s582_s27 = scalar_lea.hbm %s698_s1, 1024 }
  0x14   :  { %s27_s24 = sshll.u32 %s635_s23, 4  ;;  %p583_p8 = scmp.ne.s32.totalorder %s698_s1, %s582_s27  ;;  %s28_s24 = int_to_ptr.vmem [resolvable:$true] %s27_s24 }
  0x15   :  { %p586_p9 = scmp.lt.u32.totalorder %s582_s27, %s698_s1 }
  0x17   :  { %p588_p10 = pnand %p586_p9, %p583_p8 }
  0x19   :  { %591 = shalt.err (!%p588_p10)
}
  0x1a   :  { %s592_s4 = scalar_lea.vmem %s28_s24, 1024  ;;  %p597_p12 = scmp.lt.s32.totalorder %s28_s24, %s28_s24 }
  0x1b   :  { %p593_p11 = scmp.ne.s32.totalorder %s28_s24, %s592_s4  ;;  %p598_p13 = scmp.lt.s32.totalorder %s592_s4, %s592_s4 }
  0x1d   :  { %p599_p0 = por %p598_p13, %p597_p12 }
  0x1f   :  { %p600_p1 = pnand %p599_p0, %p593_p11 }
  0x21   :  { %603 = shalt.err (!%p600_p1)
}
  0x22   :  { %33 = dma.hbm_to_vmem [thread:$0]  %s698_s1, 1024, %s28_s24, [#allocation6], %s633_s19, %s633_s19, %s634_s20  }
  0x23   :  { %626 = dma.done.wait [#allocation3], 1024  }
  0x24   :  { %627 = vsyncadd [#allocation3], 4294966272 }
  0x25   :  { %628 = dma.done.wait [#allocation6], 1024  }
  0x26   :  { %629 = vsyncadd [#allocation6], 4294966272  ;;  %v544_v0 = vld [vmem:[#allocation5] sm:$0xff]   ;;  %v545_v1 = vld [vmem:[#allocation5 + $0x8] sm:$0xff]   ;;  %s636_s1 = smov [#allocation7]  }
  0x27   :  { %491 = vmatprep.subr.bf16.mxu0 %v544_v0  ;;  %523 = vmatprep.subr.bf16.mxu1 %v544_v0  ;;  %v546_v2 = vld [vmem:[#allocation5 + $0x10] sm:$0xff]   ;;  %v547_v3 = vld [vmem:[#allocation5 + $0x18] sm:$0xff]   ;;  %v552_v4 = vld [vmem:[#allocation2] sm:$0xff]   ;;  %s367_s6 = sshll.u32 %s636_s1, 4  ;;  %s368_s6 = int_to_ptr.vmem [resolvable:$true] %s367_s6 }
  0x28   :  { %492 = vmatpush3.bf16.msra.mxu0 %v544_v0  ;;  %531 = vmatpush3.bf16.msra.mxu1 %v544_v0  ;;  %v553_v5 = vld [vmem:[#allocation2 + $0x20] sm:$0xff]   ;;  %v549_v7 = vld [vmem:[#allocation5 + $0x28] sm:$0xff]   ;;  %v550_v8 = vld [vmem:[#allocation5 + $0x30] sm:$0xff]   ;;  %s604_s7 = scalar_lea.vmem %s368_s6, 1024  ;;  %p609_p3 = scmp.lt.s32.totalorder %s368_s6, %s368_s6 }
  0x29   :  { %493 = vmatprep.subr.bf16.mxu0 %v545_v1  ;;  %524 = vmatprep.subr.bf16.mxu1 %v545_v1  ;;  %v548_v6 = vld [vmem:[#allocation5 + $0x20] sm:$0xff]   ;;  %v551_v9 = vld [vmem:[#allocation5 + $0x38] sm:$0xff]   ;;  %v554_v10 = vld [vmem:[#allocation2 + $0x8] sm:$0xff]   ;;  %p605_p2 = scmp.ne.s32.totalorder %s368_s6, %s604_s7  ;;  %p610_p4 = scmp.lt.s32.totalorder %s604_s7, %s604_s7 }
  0x2a   :  { %507 = vmatprep.mubr.bf16.mxu0 %v552_v4  ;;  %515 = vmatprep.mubr.bf16.mxu1 %v553_v5  ;;  %v555_v11 = vld [vmem:[#allocation2 + $0x28] sm:$0xff]   ;;  %v556_v12 = vld [vmem:[#allocation2 + $0x10] sm:$0xff]   ;;  %v558_v14 = vld [vmem:[#allocation2 + $0x18] sm:$0xff]  }
  0x2b   :  { %v557_v13 = vld [vmem:[#allocation2 + $0x30] sm:$0xff]   ;;  %v559_v15 = vld [vmem:[#allocation2 + $0x38] sm:$0xff]   ;;  %p611_p5 = por %p610_p4, %p609_p3 }
  0x2c   :  { %494 = vmatpush3.bf16.msra.mxu0 %v545_v1  ;;  %532 = vmatpush3.bf16.msra.mxu1 %v545_v1 }
  0x2d   :  { %495 = vmatprep.subr.bf16.mxu0 %v546_v2  ;;  %525 = vmatprep.subr.bf16.mxu1 %v546_v2  ;;  %p612_p6 = pnand %p611_p5, %p605_p2 }
  0x30   :  { %496 = vmatpush3.bf16.msra.mxu0 %v546_v2  ;;  %533 = vmatpush3.bf16.msra.mxu1 %v546_v2 }
  0x31   :  { %497 = vmatprep.subr.bf16.mxu0 %v547_v3  ;;  %526 = vmatprep.subr.bf16.mxu1 %v547_v3 }
  0x34   :  { %498 = vmatpush3.bf16.msra.mxu0 %v547_v3  ;;  %534 = vmatpush3.bf16.msra.mxu1 %v547_v3 }
  0x35   :  { %499 = vmatprep.subr.bf16.mxu0 %v548_v6  ;;  %527 = vmatprep.subr.bf16.mxu1 %v548_v6 }
  0x38   :  { %500 = vmatpush3.bf16.msra.mxu0 %v548_v6  ;;  %535 = vmatpush3.bf16.msra.mxu1 %v548_v6 }
  0x39   :  { %501 = vmatprep.subr.bf16.mxu0 %v549_v7  ;;  %528 = vmatprep.subr.bf16.mxu1 %v549_v7 }
  0x3c   :  { %502 = vmatpush3.bf16.msra.mxu0 %v549_v7  ;;  %536 = vmatpush3.bf16.msra.mxu1 %v549_v7 }
  0x3d   :  { %503 = vmatprep.subr.bf16.mxu0 %v550_v8  ;;  %529 = vmatprep.subr.bf16.mxu1 %v550_v8 }
  0x40   :  { %504 = vmatpush3.bf16.msra.mxu0 %v550_v8  ;;  %537 = vmatpush3.bf16.msra.mxu1 %v550_v8 }
  0x41   :  { %505 = vmatprep.subr.bf16.mxu0 %v551_v9  ;;  %530 = vmatprep.subr.bf16.mxu1 %v551_v9 }
  0x44   :  { %506 = vmatpush3.bf16.msra.mxu0 %v551_v9  ;;  %538 = vmatpush3.bf16.msra.mxu1 %v551_v9 }
  0x47   :  { %508 = vmatmul.mubr.bf16.vlgmr.msra.gmra.mrb[0].mxu0 %v554_v10  ;;  %516 = vmatmul.mubr.bf16.vlgmr.msra.gmra.mrb[0].mxu1 %v555_v11 }
  0x48   :  { %511 = vmatprep.mubr.bf16.mxu0 %v556_v12  ;;  %519 = vmatprep.mubr.bf16.mxu1 %v557_v13 }
  0x4f   :  { %512 = vmatmul.mubr.bf16.gmra.mrb[4].mxu0 %v558_v14  ;;  %520 = vmatmul.mubr.bf16.gmra.mrb[4].mxu1 %v559_v15 }
 0x11a   :  { %v509_v16 = vpop.f32.mrb[0].mxu0  ;;  %v517_v17 = vpop.f32.mrb[0].mxu1 }
 0x11b   :  { %v203_v18 = vpop.f32.mrb[1].mxu0  ;;  %v235_v19 = vpop.f32.mrb[1].mxu1  ;;  %v268_v22 = vmax.f32 %v509_v16, 0.0  ;;  %v276_v23 = vmax.f32 %v517_v17, 0.0 }
 0x11c   :  { %v510_v20 = vpop.f32.mrb[2].mxu0  ;;  %v518_v21 = vpop.f32.mrb[2].mxu1  ;;  %v266_v28 = vmax.f32 %v203_v18, 0.0  ;;  %v274_v29 = vmax.f32 %v235_v19, 0.0 }
 0x11d   :  { %v269_v24 = vmax.f32 %v510_v20, 0.0  ;;  %v277_v25 = vmax.f32 %v518_v21, 0.0  ;;  %v206_v26 = vpop.f32.mrb[3].mxu0  ;;  %v238_v27 = vpop.f32.mrb[3].mxu1 }
 0x11e   :  { %v267_v30 = vmax.f32 %v206_v26, 0.0  ;;  %v275_v31 = vmax.f32 %v238_v27, 0.0 }
 0x11f   :  { %v436_v32 = vpack.c.bf16 %v269_v24, %v268_v22  ;;  %v456_v33 = vpack.c.bf16 %v277_v25, %v276_v23 }
 0x120   :  { %v431_v34 = vpack.c.bf16 %v267_v30, %v266_v28  ;;  %v451_v35 = vpack.c.bf16 %v275_v31, %v274_v29 }
 0x121   :  { %468 = vst [vmem:[#allocation7 + $0x8] sm:$0xff] %v436_v32   ;;  %472 = vst [vmem:[#allocation7 + $0x28] sm:$0xff] %v456_v33  }
 0x122   :  { %432 = vst [vmem:[#allocation7] sm:$0xff] %v431_v34   ;;  %471 = vst [vmem:[#allocation7 + $0x20] sm:$0xff] %v451_v35   ;;  %v513_v36 = vpop.f32.mrb[4].mxu0  ;;  %v521_v37 = vpop.f32.mrb[4].mxu1 }
 0x123   :  { %v219_v38 = vpop.f32.mrb[5].mxu0  ;;  %v251_v39 = vpop.f32.mrb[5].mxu1  ;;  %v272_v42 = vmax.f32 %v513_v36, 0.0  ;;  %v280_v43 = vmax.f32 %v521_v37, 0.0 }
 0x124   :  { %v514_v40 = vpop.f32.mrb[6].mxu0  ;;  %v522_v41 = vpop.f32.mrb[6].mxu1  ;;  %v270_v48 = vmax.f32 %v219_v38, 0.0  ;;  %v278_v49 = vmax.f32 %v251_v39, 0.0 }
 0x125   :  { %v273_v44 = vmax.f32 %v514_v40, 0.0  ;;  %v281_v45 = vmax.f32 %v522_v41, 0.0  ;;  %v222_v46 = vpop.f32.mrb[7].mxu0  ;;  %v254_v47 = vpop.f32.mrb[7].mxu1 }
 0x126   :  { %v271_v50 = vmax.f32 %v222_v46, 0.0  ;;  %v279_v51 = vmax.f32 %v254_v47, 0.0 }
 0x127   :  { %v446_v52 = vpack.c.bf16 %v273_v44, %v272_v42  ;;  %v466_v53 = vpack.c.bf16 %v281_v45, %v280_v43 }
 0x128   :  { %v441_v54 = vpack.c.bf16 %v271_v50, %v270_v48  ;;  %v461_v55 = vpack.c.bf16 %v279_v51, %v278_v49 }
 0x129   :  { %470 = vst [vmem:[#allocation7 + $0x18] sm:$0xff] %v446_v52   ;;  %474 = vst [vmem:[#allocation7 + $0x38] sm:$0xff] %v466_v53  }
 0x12a   :  { %469 = vst [vmem:[#allocation7 + $0x10] sm:$0xff] %v441_v54   ;;  %473 = vst [vmem:[#allocation7 + $0x30] sm:$0xff] %v461_v55  }
 0x12b   :  { %615 = shalt.err (!%p612_p6)
}
 0x12c   :  { %s616_s10 = scalar_lea.hbm %s699_s2, 1024 }
 0x12d   :  { %p617_p7 = scmp.ne.s32.totalorder %s699_s2, %s616_s10  ;;  %p620_p8 = scmp.lt.u32.totalorder %s616_s10, %s699_s2 }
 0x12f   :  { %p622_p9 = pnand %p620_p8, %p617_p7 }
 0x131   :  { %625 = shalt.err (!%p622_p9)
}
 0x132   :  { %373 = dma.vmem_to_hbm [thread:$0]  %s368_s6, 1024, %s699_s2, [#allocation4], %s633_s19, %s633_s19, %s634_s20  }
 0x133   :  { %630 = dma.done.wait [#allocation4], 1024  }
 0x134   :  { %631 = vsyncadd [#allocation4], 4294966272 }
 0x135   :  { %377 = vsyncpa [#allocation3], 1 }
 0x136   :  { %378 = vsyncpa [#allocation6], 1 }
 0x137   :  { %379 = vsyncpa [#allocation4], 1 }

</bundles_post_ra>
